<compile_context>
chip_gen: v5e
topology: v5e:2x2
jax: 0.10.0
libtpu: 0.0.40
codegen_flags: <defaults>
</compile_context>

<pallas_src>
import functools

import jax
import jax.numpy as jnp
from jax import lax
from jax.experimental import pallas as pl
from jax.experimental.pallas import tpu as pltpu


def _round_up(n: int, m: int) -> int:
    return ((n + m - 1) // m) * m


def layer_stack_kernel(x_ref, w1_ref, b1_ref, w2_ref, b2_ref, w3_ref, b3_ref,
                       o_ref):
    # x_ref : (tb, 1024)  batch rows on sublanes, features on lanes (bf16/f32)
    # w1_ref: (16, 1024)  W1^T, same dtype as x
    # b1_ref: (16, 1)  w2_ref: (32, 16)  b2_ref: (32, 1)
    # w3_ref: (1, 32)  b3_ref: (1, 1)                      (all f32)
    # o_ref : (1, 1, tb)  lane-dense output row for this batch tile
    x = x_ref[...]

    # fc1 in transposed orientation: h1t[f, b] = sum_d W1[d, f] * x[b, d].
    # Contract both operands on their last (lane) dim == transposed-rhs matmul.
    h1t = lax.dot_general(w1_ref[...], x,
                          dimension_numbers=(((1,), (1,)), ((), ())),
                          preferred_element_type=jnp.float32)
    h1t = jnp.clip(h1t + b1_ref[...], 0.0, 1.0)                  # (16, tb) f32

    # fc2 + ClippedReLU
    h2t = jnp.dot(w2_ref[...], h1t, preferred_element_type=jnp.float32)
    h2t = jnp.clip(h2t + b2_ref[...], 0.0, 1.0)                  # (32, tb) f32

    # fc3 (no activation)
    yt = jnp.dot(w3_ref[...], h2t, preferred_element_type=jnp.float32)
    yt = yt + b3_ref[...]                                        # (1, tb) f32

    o_ref[...] = yt[None].astype(o_ref.dtype)                    # (1, 1, tb)


@functools.partial(jax.jit, static_argnames=("tb", "use_bf16_inputs"))
def layer_stack_forward(x, w1, b1, w2, b2, w3, b3, *, tb=512,
                        use_bf16_inputs=True):
    """x: (B, 1024) f32. Weights in (in, out) layout, biases as (1, out)."""
    assert tb % 8 == 0 and tb >= 8
    B, D = x.shape

    # Static tile heuristic: big tiles to amortize per-step overhead, but keep
    # >= 2 grid steps for mid/large batches (v7x has 2 TCs; also keeps the
    # input/output double-buffer pipeline busy).
    if B >= 2 * tb:
        tb_eff = tb
    elif B >= 256:
        tb_eff = min(tb, _round_up(-(-B // 2), 8))
    else:
        tb_eff = min(tb, _round_up(B, 8))
    n_tiles = pl.cdiv(B, tb_eff)

    # Kernel-friendly layouts (tiny one-time XLA transposes of the weights).
    w1t = w1.T                      # (16, 1024)
    b1c = b1.reshape(-1, 1)         # (16, 1)
    w2t = w2.T                      # (32, 16)
    b2c = b2.reshape(-1, 1)         # (32, 1)
    w3t = w3.T                      # (1, 32)
    b3r = b3.reshape(1, 1)          # (1, 1)

    if use_bf16_inputs:
        x_in = x.astype(jnp.bfloat16)
        w1t = w1t.astype(jnp.bfloat16)
    else:
        x_in = x

    in_bytes = x_in.size * x_in.dtype.itemsize
    w_bytes = sum(a.size * a.dtype.itemsize
                  for a in (w1t, b1c, w2t, b2c, w3t, b3r))
    out_bytes = n_tiles * tb_eff * 4
    cost = pl.CostEstimate(
        flops=2 * B * (D * 16 + 16 * 32 + 32 * 1),
        transcendentals=0,
        bytes_accessed=in_bytes + w_bytes + out_bytes)

    out = pl.pallas_call(
        layer_stack_kernel,
        out_shape=jax.ShapeDtypeStruct((n_tiles, 1, tb_eff), jnp.float32),
        grid_spec=pltpu.PrefetchScalarGridSpec(
            num_scalar_prefetch=0,
            grid=(n_tiles,),
            in_specs=[
                pl.BlockSpec((tb_eff, D), lambda i: (i, 0)),   # x tile
                pl.BlockSpec(w1t.shape, lambda i: (0, 0)),     # W1^T
                pl.BlockSpec(b1c.shape, lambda i: (0, 0)),     # b1 (col)
                pl.BlockSpec(w2t.shape, lambda i: (0, 0)),     # W2^T
                pl.BlockSpec(b2c.shape, lambda i: (0, 0)),     # b2 (col)
                pl.BlockSpec(w3t.shape, lambda i: (0, 0)),     # W3^T
                pl.BlockSpec(b3r.shape, lambda i: (0, 0)),     # b3
            ],
            out_specs=pl.BlockSpec((1, 1, tb_eff), lambda i: (i, 0, 0)),
        ),
        compiler_params=pltpu.CompilerParams(
            dimension_semantics=("parallel",),
            vmem_limit_bytes=32 * 1024 * 1024),
        cost_estimate=cost,
    )(x_in, w1t, b1c, w2t, b2c, w3t, b3r)

    # (n_tiles, 1, tb) -> (n_tiles * tb, 1); drop tail padding rows.
    return out.reshape(n_tiles * tb_eff, 1)[:B]


def init_params(key):
    """Deterministic init mirroring nn.Linear shapes (stored as (in, out))."""
    k1, k2, k3, k4, k5, k6 = jax.random.split(key, 6)

    def lin(kw, kb, fan_in, fan_out):
        bound = 1.0 / jnp.sqrt(fan_in)
        w = jax.random.uniform(kw, (fan_in, fan_out), jnp.float32,
                               -bound, bound)
        b = jax.random.uniform(kb, (1, fan_out), jnp.float32, -bound, bound)
        return w, b

    w1, b1 = lin(k1, k2, 1024, 16)
    w2, b2 = lin(k3, k4, 16, 32)
    w3, b3 = lin(k5, k6, 32, 1)
    return w1, b1, w2, b2, w3, b3


def reference_forward(x, w1, b1, w2, b2, w3, b3):
    hp = jax.lax.Precision.HIGHEST
    h1 = jnp.clip(jnp.dot(x, w1, precision=hp) + b1, 0.0, 1.0)
    h2 = jnp.clip(jnp.dot(h1, w2, precision=hp) + b2, 0.0, 1.0)
    return jnp.dot(h2, w3, precision=hp) + b3


if __name__ == "__main__":
    key = jax.random.PRNGKey(0)
    kx1, kx2, kp = jax.random.split(key, 3)
    params = init_params(kp)
    w1, b1, w2, b2, w3, b3 = params

    # --- test 1: default path (bf16 inputs), multi-step grid -----------------
    B = 256
    x = jax.random.normal(kx1, (B, 1024), jnp.float32)
    out = jax.block_until_ready(layer_stack_forward(x, *params))
    assert out.shape == (B, 1)
    # Reference with the same bf16 rounding of x / W1 that the kernel applies.
    x_r = x.astype(jnp.bfloat16).astype(jnp.float32)
    w1_r = w1.astype(jnp.bfloat16).astype(jnp.float32)
    ref = reference_forward(x_r, w1_r, b1, w2, b2, w3, b3)
    err = jnp.max(jnp.abs(out - ref))
    assert jnp.allclose(out, ref, atol=2e-3, rtol=2e-3), f"bf16 max err {err}"

    # --- test 2: f32 path, ragged batch (not a multiple of the tile) ---------
    B2 = 42
    x2 = jax.random.normal(kx2, (B2, 1024), jnp.float32)
    out2 = jax.block_until_ready(
        layer_stack_forward(x2, *params, tb=16, use_bf16_inputs=False))
    assert out2.shape == (B2, 1)
    ref2 = reference_forward(x2, *params)
    err2 = jnp.max(jnp.abs(out2 - ref2))
    assert jnp.allclose(out2, ref2, atol=1e-3, rtol=1e-3), f"f32 max err {err2}"

    print("KERNEL_OK")
</pallas_src>

<mosaic_0001>
module attributes {stable_mosaic.version = 11 : i64} {
  func.func @layer_stack_kernel(%arg0: i32, %arg1: memref<128x1024xbf16, #tpu.memory_space<vmem>>, %arg2: memref<16x1024xbf16, #tpu.memory_space<vmem>>, %arg3: memref<16x1xf32, #tpu.memory_space<vmem>>, %arg4: memref<32x16xf32, #tpu.memory_space<vmem>>, %arg5: memref<32x1xf32, #tpu.memory_space<vmem>>, %arg6: memref<1x32xf32, #tpu.memory_space<vmem>>, %arg7: memref<1x1xf32, #tpu.memory_space<vmem>>, %arg8: memref<1x1x128xf32, #tpu.memory_space<vmem>>) attributes {dimension_semantics = [#tpu.dimension_semantics<parallel>], iteration_bounds = array<i64: 2>, scalar_prefetch = 0 : i64, scratch_operands = 0 : i64, tpu.core_type = #tpu.core_type<tc>, window_params = [{transform_indices = @transform_0, window_bounds = array<i64: 128, 1024>}, {pipeline_mode = #tpu.pipeline_mode<synchronous>, transform_indices = @transform_1, window_bounds = array<i64: 16, 1024>}, {pipeline_mode = #tpu.pipeline_mode<synchronous>, transform_indices = @transform_2, window_bounds = array<i64: 16, 1>}, {pipeline_mode = #tpu.pipeline_mode<synchronous>, transform_indices = @transform_3, window_bounds = array<i64: 32, 16>}, {pipeline_mode = #tpu.pipeline_mode<synchronous>, transform_indices = @transform_4, window_bounds = array<i64: 32, 1>}, {pipeline_mode = #tpu.pipeline_mode<synchronous>, transform_indices = @transform_5, window_bounds = array<i64: 1, 32>}, {pipeline_mode = #tpu.pipeline_mode<synchronous>, transform_indices = @transform_6, window_bounds = array<i64: 1, 1>}, {transform_indices = @transform_7, window_bounds = array<i64: 1, 1, 128>}]} {
    %c0 = arith.constant 0 : index
    %c0_0 = arith.constant 0 : index
    %0 = vector.load %arg1[%c0, %c0_0] : memref<128x1024xbf16, #tpu.memory_space<vmem>>, vector<128x1024xbf16>
    %c0_1 = arith.constant 0 : index
    %c0_2 = arith.constant 0 : index
    %1 = vector.load %arg2[%c0_1, %c0_2] : memref<16x1024xbf16, #tpu.memory_space<vmem>>, vector<16x1024xbf16>
    %cst = arith.constant dense<0.000000e+00> : vector<16x128xf32>
    %2 = tpu.matmul %1, %0, %cst {dimension_numbers = #tpu.dot_dimension_numbers<[1], [1], [0], [0], [0, 0, 1, 0], [], []>} : vector<16x1024xbf16>, vector<128x1024xbf16>, vector<16x128xf32> -> vector<16x128xf32>
    %c0_3 = arith.constant 0 : index
    %c0_4 = arith.constant 0 : index
    %3 = vector.load %arg3[%c0_3, %c0_4] : memref<16x1xf32, #tpu.memory_space<vmem>>, vector<16x1xf32>
    %4 = vector.broadcast %3 : vector<16x1xf32> to vector<16x128xf32>
    %5 = arith.addf %2, %4 : vector<16x128xf32>
    %cst_5 = arith.constant 0.000000e+00 : f32
    %cst_6 = arith.constant 1.000000e+00 : f32
    %6 = vector.broadcast %cst_5 : f32 to vector<16x128xf32>
    %7 = arith.maximumf %6, %5 : vector<16x128xf32>
    %8 = vector.broadcast %cst_6 : f32 to vector<16x128xf32>
    %9 = arith.minimumf %8, %7 : vector<16x128xf32>
    %c0_7 = arith.constant 0 : index
    %c0_8 = arith.constant 0 : index
    %10 = vector.load %arg4[%c0_7, %c0_8] : memref<32x16xf32, #tpu.memory_space<vmem>>, vector<32x16xf32>
    %cst_9 = arith.constant dense<0.000000e+00> : vector<32x128xf32>
    %11 = tpu.matmul %10, %9, %cst_9 {dimension_numbers = #tpu.dot_dimension_numbers<[1], [0], [0], [1], [0, 0, 1, 1], [], []>} : vector<32x16xf32>, vector<16x128xf32>, vector<32x128xf32> -> vector<32x128xf32>
    %c0_10 = arith.constant 0 : index
    %c0_11 = arith.constant 0 : index
    %12 = vector.load %arg5[%c0_10, %c0_11] : memref<32x1xf32, #tpu.memory_space<vmem>>, vector<32x1xf32>
    %13 = vector.broadcast %12 : vector<32x1xf32> to vector<32x128xf32>
    %14 = arith.addf %11, %13 : vector<32x128xf32>
    %cst_12 = arith.constant 0.000000e+00 : f32
    %cst_13 = arith.constant 1.000000e+00 : f32
    %15 = vector.broadcast %cst_12 : f32 to vector<32x128xf32>
    %16 = arith.maximumf %15, %14 : vector<32x128xf32>
    %17 = vector.broadcast %cst_13 : f32 to vector<32x128xf32>
    %18 = arith.minimumf %17, %16 : vector<32x128xf32>
    %c0_14 = arith.constant 0 : index
    %c0_15 = arith.constant 0 : index
    %19 = vector.load %arg6[%c0_14, %c0_15] : memref<1x32xf32, #tpu.memory_space<vmem>>, vector<1x32xf32>
    %cst_16 = arith.constant dense<0.000000e+00> : vector<1x128xf32>
    %20 = tpu.matmul %19, %18, %cst_16 {dimension_numbers = #tpu.dot_dimension_numbers<[1], [0], [0], [1], [0, 0, 1, 1], [], []>} : vector<1x32xf32>, vector<32x128xf32>, vector<1x128xf32> -> vector<1x128xf32>
    %c0_17 = arith.constant 0 : index
    %c0_18 = arith.constant 0 : index
    %21 = vector.load %arg7[%c0_17, %c0_18] : memref<1x1xf32, #tpu.memory_space<vmem>>, vector<1x1xf32>
    %22 = vector.broadcast %21 : vector<1x1xf32> to vector<1x128xf32>
    %23 = arith.addf %20, %22 : vector<1x128xf32>
    %24 = vector.shape_cast %23 : vector<1x128xf32> to vector<1x1x128xf32>
    %c0_19 = arith.constant 0 : index
    %c0_20 = arith.constant 0 : index
    %c0_21 = arith.constant 0 : index
    %25 = vector.load %arg8[%c0_19, %c0_20, %c0_21] : memref<1x1x128xf32, #tpu.memory_space<vmem>>, vector<1x1x128xf32>
    tpu.vector_store %arg8[%c0_19, %c0_20, %c0_21], %24 {strides = array<i32>} : memref<1x1x128xf32, #tpu.memory_space<vmem>>, vector<1x1x128xf32>,
    return
  }
  func.func @transform_0(%arg0: i32) -> (i32, i32) {
    %c0_i32 = arith.constant 0 : i32
    %c0_i32_0 = arith.constant 0 : i32
    return %arg0, %c0_i32 : i32, i32
  }
  func.func @transform_1(%arg0: i32) -> (i32, i32) {
    %c0_i32 = arith.constant 0 : i32
    %c0_i32_0 = arith.constant 0 : i32
    %c0_i32_1 = arith.constant 0 : i32
    return %c0_i32, %c0_i32_0 : i32, i32
  }
  func.func @transform_2(%arg0: i32) -> (i32, i32) {
    %c0_i32 = arith.constant 0 : i32
    %c0_i32_0 = arith.constant 0 : i32
    %c0_i32_1 = arith.constant 0 : i32
    return %c0_i32, %c0_i32_0 : i32, i32
  }
  func.func @transform_3(%arg0: i32) -> (i32, i32) {
    %c0_i32 = arith.constant 0 : i32
    %c0_i32_0 = arith.constant 0 : i32
    %c0_i32_1 = arith.constant 0 : i32
    return %c0_i32, %c0_i32_0 : i32, i32
  }
  func.func @transform_4(%arg0: i32) -> (i32, i32) {
    %c0_i32 = arith.constant 0 : i32
    %c0_i32_0 = arith.constant 0 : i32
    %c0_i32_1 = arith.constant 0 : i32
    return %c0_i32, %c0_i32_0 : i32, i32
  }
  func.func @transform_5(%arg0: i32) -> (i32, i32) {
    %c0_i32 = arith.constant 0 : i32
    %c0_i32_0 = arith.constant 0 : i32
    %c0_i32_1 = arith.constant 0 : i32
    return %c0_i32, %c0_i32_0 : i32, i32
  }
  func.func @transform_6(%arg0: i32) -> (i32, i32) {
    %c0_i32 = arith.constant 0 : i32
    %c0_i32_0 = arith.constant 0 : i32
    %c0_i32_1 = arith.constant 0 : i32
    return %c0_i32, %c0_i32_0 : i32, i32
  }
  func.func @transform_7(%arg0: i32) -> (i32, i32, i32) {
    %c0_i32 = arith.constant 0 : i32
    %c0_i32_0 = arith.constant 0 : i32
    %c0_i32_1 = arith.constant 0 : i32
    return %arg0, %c0_i32, %c0_i32_0 : i32, i32, i32
  }
}

</mosaic_0001>

<bundles_post_ra>
// kernel: layer_stack_forward.1
= control target key start
LH: loop header
LB: loop body
LE: loop exit
PB: predicated region body
PF: predicated region fallthrough
CT: control target
= control target key end

     0   :  { %s1847_s0 = inlined_call_operand.vmem [shape: bf16[256,1024], index: 0, kind: input, shape index: {}]   ;;  %s1848_s1 = inlined_call_operand.vmem [shape: bf16[16,1024], index: 1, kind: input, shape index: {}]   ;;  %s1849_s2 = inlined_call_operand.vmem [shape: f32[16,1], index: 2, kind: input, shape index: {}]   ;;  %s1850_s3 = inlined_call_operand.vmem [shape: f32[32,16], index: 3, kind: input, shape index: {}]   ;;  %s1851_s4 = inlined_call_operand.vmem [shape: f32[32,1], index: 4, kind: input, shape index: {}]   ;;  %s1852_s5 = inlined_call_operand.vmem [shape: f32[1,32], index: 5, kind: input, shape index: {}]   ;;  %s1853_s6 = inlined_call_operand.<no memory space> [shape: f32[1,1], index: 6, kind: input, shape index: {}]   ;;  %s1854_s7 = inlined_call_operand.hbm [shape: f32[2,1,128], index: 7, kind: output, shape index: {}]  }
   0x1   :  { %v12_v0 = vstv %s1853_s6 }
   0x2   :  { %13 = vst [vmem:[#allocation2] sm:$0x1] %v12_v0 }
   0x3   :  { %14 = vsyncpa [#allocation4], 0 }
   0x4   :  { %16 = vsyncpa [#allocation4 + $0x1], 0  ;;  %s1552_s26 = smov 0   ;;  %s1554_s27 = smov 0  }
   0x5   :  { %s1556_s28 = smov 0   ;;  %s1558_s29 = smov 0  }
   0x6 LB: > { %s1573_s6 = sadd.s32 4294967295, %s1506_s29   ;;  %s1022_s30 = sadd.s32 4294967294, %s1506_s29   ;;  %s1506_s29 = sphi %s1558_s29, %s1860_s29   ;;  %s1502_s28 = sphi %s1556_s28, %s1859_s28   ;;  %s1498_s27 = sphi %s1554_s27, %s1858_s27   ;;  %s1494_s26 = sphi %s1552_s26, %s1857_s26  }
   0x7   : > { %s1577_s8 = sadd.s32 1, %s1506_s29   ;;  %s181_s9 = sadd.s32 1, %s1502_s28 }
   0x8   : > { %s178_s10 = ssub.s32 %s1506_s29, %s1577_s8  ;;  %p191_p0 = scmp.ne.s32.totalorder %s1502_s28, %s1498_s27 }
   0x9   : > { %p179_p1 = scmp.eq.s32.totalorder %s178_s10, 0  ;;  %p192_p2 = scmp.eq.s32.totalorder %s1573_s6, 1 }
   0xa   : > { %p197_p3 = scmp.ne.s32.totalorder %s1498_s27, %s1494_s26  ;;  %p198_p4 = scmp.eq.s32.totalorder %s1022_s30, 1 }
   0xb   : > { %s1588_s11 = scalar_select %p179_p1, %s1502_s28, %s181_s9  }
   0xc   : > { %p1590_p5 = por %p192_p2, %p191_p0  ;;  %p1594_p6 = por %p198_p4, %p197_p3 }
   0xd   : > { %p1025_p7 = scmp.ge.s32.totalorder %s1506_s29, 1  ;;  %p244_p8 = scmp.lt.s32.totalorder %s1506_s29, 3 }
   0xf   : > { %p245_p9 = pnand %p1025_p7, %p244_p8 }
  0x10   : > { %s1026_s14 = sshll.u32 (!%p245_p9), %s1573_s6, 4  ;;  %s963_s16 = scalar_lea.hbm (!%p245_p9), %s1854_s7, %s1573_s6 }
  0x11   : > { %248 = sbr.rel (%p245_p9) target bundleno = 590 (0x24e), region = 48  ;;  %p277_p10 = scmp.lt.s32.totalorder (!%p245_p9), %s1026_s14, 31 }
  0x12   : > { %s967_s20 = sshll.u32 (!%p245_p9), %s963_s16, 4  ;;  %s1464_s25 = scalar_lea.hbm (!%p245_p9), %s1854_s7, 2  ;;  %s968_s20 = int_to_ptr.hbm [resolvable:$true] %s967_s20 }
  0x13   : > { %s1458_s22 = sshra.s32 (!%p245_p9), %s968_s20, 4  ;;  %s1459_s22 = int_to_ptr.hbm [resolvable:$true] %s1458_s22 }
  0x14   : > { %s1460_s23 = scalar_lea.hbm (!%p245_p9), %s1459_s22, 1  ;;  %p1465_p0 = scmp.lt.s32.totalorder (!%p245_p9), %s1459_s22, %s1854_s7 }
  0x15   : > { %p1461_p11 = scmp.ne.s32.totalorder (!%p245_p9), %s1459_s22, %s1460_s23  ;;  %p1466_p1 = scmp.lt.s32.totalorder (!%p245_p9), %s1464_s25, %s1460_s23 }
  0x16   : > { %s1862_s14 = smov (!%p277_p10, %s1026_s14), 31  ;;  %vm871_vm0 = vcmask 130048   ;;  %vm929_vm1 = vcmask 261120  }
  0x17   : > { %s1324_s15 = sshll.u32 %s1862_s14, 5  ;;  %s274_s14 = sand.u32 1, %s1498_s27  }
  0x18   : > { %s1604_s18 = scalar_lea.vmem %s1847_s0, %s1324_s15  ;;  %s275_s17 = scalar_lea.vmem [#allocation3], %s274_s14 }
  0x19   : > { %v1287_v1 = vld [vmem:[%s1604_s18 + $0x1c0] sm:$0xf]  ;;  %v1381_v3 = vld [vmem:[%s1604_s18 + $0x1c4] sm:$0xf]  ;;  %v1295_v6 = vld [vmem:[%s1604_s18 + $0x1c8] sm:$0xf]  ;;  %p1462_p12 = pnand %p1461_p11, %p1590_p5  ;;  %p1467_p2 = por %p1466_p1, %p1465_p0 }
  0x1a   : > { %v1385_v2 = vld [vmem:[%s1604_s18 + $0x1dc] sm:$0xf0]  ;;  %v1289_v5 = vld [vmem:[%s1604_s18 + $0x1e0] sm:$0xf0]  ;;  %v1386_v7 = vld [vmem:[%s1604_s18 + $0x1e4] sm:$0xf0] }
  0x1b   : > { %v1288_v4 = vor.u32 %v1385_v2, %v1287_v1  ;;  %v1292_v8 = vor.u32 %v1381_v3, %v1289_v5  ;;  %v1296_v9 = vor.u32 %v1386_v7, %v1295_v6  ;;  %v1382_v10 = vld [vmem:[%s1604_s18 + $0x1cc] sm:$0xf]  ;;  %v1255_v13 = vld [vmem:[%s1604_s18 + $0x180] sm:$0xf]  ;;  %v1373_v15 = vld [vmem:[%s1604_s18 + $0x184] sm:$0xf]  ;;  %p1463_p13 = pneg %p1462_p12 }
  0x1c   : > { %v1297_v11 = vld [vmem:[%s1604_s18 + $0x1e8] sm:$0xf0]  ;;  %v1377_v14 = vld [vmem:[%s1604_s18 + $0x19c] sm:$0xf0]  ;;  %v1257_v16 = vld [vmem:[%s1604_s18 + $0x1a0] sm:$0xf0] }
  0x1d   : > { %727 = vmatpush.bf16.xpose.msra.mxu0 %v1288_v4  ;;  %v1300_v12 = vor.u32 %v1382_v10, %v1297_v11  ;;  %741 = vmatpush.bf16.xpose.msra.mxu1 %v1292_v8  ;;  %v1263_v17 = vld [vmem:[%s1604_s18 + $0x188] sm:$0xf]  ;;  %v1374_v19 = vld [vmem:[%s1604_s18 + $0x18c] sm:$0xf]  ;;  %v1256_v21 = vor.u32 %v1377_v14, %v1255_v13  ;;  %v1260_v22 = vor.u32 %v1373_v15, %v1257_v16  ;;  %v1223_v25 = vld [vmem:[%s1604_s18 + $0x140] sm:$0xf]  ;;  %p1468_p3 = pnand %p1467_p2, %p1463_p13 }
  0x1e   : > { %755 = vmatpush.bf16.xpose.msra.mxu2 %v1296_v9  ;;  %v1378_v18 = vld [vmem:[%s1604_s18 + $0x1a4] sm:$0xf0]  ;;  %v1265_v20 = vld [vmem:[%s1604_s18 + $0x1a8] sm:$0xf0]  ;;  %v1369_v26 = vld [vmem:[%s1604_s18 + $0x15c] sm:$0xf0] }
  0x1f   : > { %769 = vmatpush.bf16.xpose.msra.mxu3 %v1300_v12  ;;  %v1264_v23 = vor.u32 %v1378_v18, %v1263_v17  ;;  %v1268_v24 = vor.u32 %v1374_v19, %v1265_v20  ;;  %v1365_v27 = vld [vmem:[%s1604_s18 + $0x144] sm:$0xf]  ;;  %v1231_v29 = vld [vmem:[%s1604_s18 + $0x148] sm:$0xf]  ;;  %v1366_v31 = vld [vmem:[%s1604_s18 + $0x14c] sm:$0xf]  ;;  %v1224_v33 = vor.u32 %v1369_v26, %v1223_v25 }
  0x20   : > { %v1225_v28 = vld [vmem:[%s1604_s18 + $0x160] sm:$0xf0]  ;;  %v1370_v30 = vld [vmem:[%s1604_s18 + $0x164] sm:$0xf0]  ;;  %v1233_v32 = vld [vmem:[%s1604_s18 + $0x168] sm:$0xf0] }
  0x21   : > { %v1228_v34 = vor.u32 %v1365_v27, %v1225_v28  ;;  %v1232_v35 = vor.u32 %v1370_v30, %v1231_v29  ;;  %v1236_v36 = vor.u32 %v1366_v31, %v1233_v32  ;;  %v1191_v37 = vld [vmem:[%s1604_s18 + $0x100] sm:$0xf]  ;;  %v1357_v39 = vld [vmem:[%s1604_s18 + $0x104] sm:$0xf]  ;;  %v1199_v41 = vld [vmem:[%s1604_s18 + $0x108] sm:$0xf] }
  0x22   : > { %v1361_v38 = vld [vmem:[%s1604_s18 + $0x11c] sm:$0xf0]  ;;  %v1193_v40 = vld [vmem:[%s1604_s18 + $0x120] sm:$0xf0]  ;;  %v1362_v42 = vld [vmem:[%s1604_s18 + $0x124] sm:$0xf0] }
  0x23   : > { %v1358_v43 = vld [vmem:[%s1604_s18 + $0x10c] sm:$0xf]  ;;  %v1192_v45 = vor.u32 %v1361_v38, %v1191_v37  ;;  %v1196_v46 = vor.u32 %v1357_v39, %v1193_v40  ;;  %v1200_v47 = vor.u32 %v1362_v42, %v1199_v41  ;;  %v1159_v49 = vld [vmem:[%s1604_s18 + $0xc0] sm:$0xf]  ;;  %v1349_v51 = vld [vmem:[%s1604_s18 + $0xc4] sm:$0xf] }
  0x24   : > { %v1201_v44 = vld [vmem:[%s1604_s18 + $0x128] sm:$0xf0]  ;;  %v1353_v50 = vld [vmem:[%s1604_s18 + $0xdc] sm:$0xf0]  ;;  %v1161_v52 = vld [vmem:[%s1604_s18 + $0xe0] sm:$0xf0] }
  0x25   : > { %728 = vmatpush.bf16.xpose.msra.mxu0 %v1256_v21  ;;  %742 = vmatpush.bf16.xpose.msra.mxu1 %v1260_v22  ;;  %v1204_v48 = vor.u32 %v1358_v43, %v1201_v44  ;;  %v1167_v53 = vld [vmem:[%s1604_s18 + $0xc8] sm:$0xf]  ;;  %v1350_v55 = vld [vmem:[%s1604_s18 + $0xcc] sm:$0xf]  ;;  %v1160_v57 = vor.u32 %v1353_v50, %v1159_v49  ;;  %v1164_v58 = vor.u32 %v1349_v51, %v1161_v52  ;;  %v1127_v61 = vld [vmem:[%s1604_s18 + $0x80] sm:$0xf] }
  0x26   : > { %756 = vmatpush.bf16.xpose.msra.mxu2 %v1264_v23  ;;  %v1354_v54 = vld [vmem:[%s1604_s18 + $0xe4] sm:$0xf0]  ;;  %v1169_v56 = vld [vmem:[%s1604_s18 + $0xe8] sm:$0xf0]  ;;  %v1345_v62 = vld [vmem:[%s1604_s18 + $0x9c] sm:$0xf0] }
  0x27   : > { %770 = vmatpush.bf16.xpose.msra.mxu3 %v1268_v24  ;;  %v1168_v59 = vor.u32 %v1354_v54, %v1167_v53  ;;  %v1172_v60 = vor.u32 %v1350_v55, %v1169_v56  ;;  %v1341_v63 = vld [vmem:[%s1604_s18 + $0x84] sm:$0xf]  ;;  %v1135_v1 = vld [vmem:[%s1604_s18 + $0x88] sm:$0xf]  ;;  %v1342_v3 = vld [vmem:[%s1604_s18 + $0x8c] sm:$0xf]  ;;  %v1128_v5 = vor.u32 %v1345_v62, %v1127_v61 }
  0x28   : > { %v1129_v0 = vld [vmem:[%s1604_s18 + $0xa0] sm:$0xf0]  ;;  %v1346_v2 = vld [vmem:[%s1604_s18 + $0xa4] sm:$0xf0]  ;;  %v1137_v4 = vld [vmem:[%s1604_s18 + $0xa8] sm:$0xf0] }
  0x29   : > { %v1132_v6 = vor.u32 %v1341_v63, %v1129_v0  ;;  %v1136_v7 = vor.u32 %v1346_v2, %v1135_v1  ;;  %v1140_v8 = vor.u32 %v1342_v3, %v1137_v4  ;;  %v1095_v9 = vld [vmem:[%s1604_s18 + $0x40] sm:$0xf]  ;;  %v1333_v11 = vld [vmem:[%s1604_s18 + $0x44] sm:$0xf]  ;;  %v1103_v13 = vld [vmem:[%s1604_s18 + $0x48] sm:$0xf] }
  0x2a   : > { %v1337_v10 = vld [vmem:[%s1604_s18 + $0x5c] sm:$0xf0]  ;;  %v1097_v12 = vld [vmem:[%s1604_s18 + $0x60] sm:$0xf0]  ;;  %v1338_v14 = vld [vmem:[%s1604_s18 + $0x64] sm:$0xf0] }
  0x2b   : > { %v1334_v15 = vld [vmem:[%s1604_s18 + $0x4c] sm:$0xf]  ;;  %v1096_v17 = vor.u32 %v1337_v10, %v1095_v9  ;;  %v1100_v18 = vor.u32 %v1333_v11, %v1097_v12  ;;  %v1104_v19 = vor.u32 %v1338_v14, %v1103_v13  ;;  %v1063_v21 = vld [vmem:[%s1604_s18] sm:$0xf]  ;;  %v1325_v23 = vld [vmem:[%s1604_s18 + $0x4] sm:$0xf] }
  0x2c   : > { %v1105_v16 = vld [vmem:[%s1604_s18 + $0x68] sm:$0xf0]  ;;  %v1329_v22 = vld [vmem:[%s1604_s18 + $0x1c] sm:$0xf0]  ;;  %v1065_v24 = vld [vmem:[%s1604_s18 + $0x20] sm:$0xf0] }
  0x2d   : > { %729 = vmatpush.bf16.xpose.msra.mxu0 %v1224_v33  ;;  %743 = vmatpush.bf16.xpose.msra.mxu1 %v1228_v34  ;;  %v1108_v20 = vor.u32 %v1334_v15, %v1105_v16  ;;  %v1071_v25 = vld [vmem:[%s1604_s18 + $0x8] sm:$0xf]  ;;  %v1326_v27 = vld [vmem:[%s1604_s18 + $0xc] sm:$0xf]  ;;  %v1303_v29 = vld [vmem:[%s1604_s18 + $0x1d0] sm:$0xf]  ;;  %v1064_v32 = vor.u32 %v1329_v22, %v1063_v21 }
  0x2e   : > { %757 = vmatpush.bf16.xpose.msra.mxu2 %v1232_v35  ;;  %v1330_v26 = vld [vmem:[%s1604_s18 + $0x24] sm:$0xf0]  ;;  %v1073_v28 = vld [vmem:[%s1604_s18 + $0x28] sm:$0xf0]  ;;  %v1387_v30 = vld [vmem:[%s1604_s18 + $0x1ec] sm:$0xf0] }
  0x2f   : > { %771 = vmatpush.bf16.xpose.msra.mxu3 %v1236_v36  ;;  %v1383_v31 = vld [vmem:[%s1604_s18 + $0x1d4] sm:$0xf]  ;;  %v1311_v34 = vld [vmem:[%s1604_s18 + $0x1d8] sm:$0xf]  ;;  %v1068_v36 = vor.u32 %v1325_v23, %v1065_v24  ;;  %v1072_v37 = vor.u32 %v1330_v26, %v1071_v25  ;;  %v1384_v38 = vld [vmem:[%s1604_s18 + $0x1dc] sm:$0xf]  ;;  %v1076_v40 = vor.u32 %v1326_v27, %v1073_v28  ;;  %v1304_v41 = vor.u32 %v1387_v30, %v1303_v29 }
  0x30   : > { %v1305_v33 = vld [vmem:[%s1604_s18 + $0x1f0] sm:$0xf0]  ;;  %v1388_v35 = vld [vmem:[%s1604_s18 + $0x1f4] sm:$0xf0]  ;;  %v1313_v39 = vld [vmem:[%s1604_s18 + $0x1f8] sm:$0xf0] }
  0x31   : > { %v1308_v42 = vor.u32 %v1383_v31, %v1305_v33  ;;  %v1312_v43 = vor.u32 %v1388_v35, %v1311_v34  ;;  %v1316_v44 = vor.u32 %v1384_v38, %v1313_v39  ;;  %v1279_v49 = vld [vmem:[%s1604_s18 + $0x198] sm:$0xf]  ;;  %v1039_v51 = vld [vmem:[%s1848_s1 + $0x8] sm:$0xf]  ;;  %v1376_v53 = vld [vmem:[%s1604_s18 + $0x19c] sm:$0xf] }
  0x32   : > { %v1380_v50 = vld [vmem:[%s1604_s18 + $0x1b4] sm:$0xf0]  ;;  %v1394_v52 = vld [vmem:[%s1848_s1 + $0x24] sm:$0xf0]  ;;  %v1281_v54 = vld [vmem:[%s1604_s18 + $0x1b8] sm:$0xf0] }
  0x33   : > { %v1040_v55 = vor.u32 %v1394_v52, %v1039_v51  ;;  %v1371_v61 = vld [vmem:[%s1604_s18 + $0x16c] sm:$0xf0]  ;;  %v1367_v62 = vld [vmem:[%s1604_s18 + $0x154] sm:$0xf]  ;;  %v1247_v0 = vld [vmem:[%s1604_s18 + $0x158] sm:$0xf] }
  0x34   : > { %v1241_v63 = vld [vmem:[%s1604_s18 + $0x170] sm:$0xf0]  ;;  %v1372_v1 = vld [vmem:[%s1604_s18 + $0x174] sm:$0xf0]  ;;  %v1031_v2 = vld [vmem:[%s1848_s1] sm:$0xf] }
  0x35   : > { %730 = vmatpush.bf16.xpose.msra.mxu0 %v1192_v45  ;;  %744 = vmatpush.bf16.xpose.msra.mxu1 %v1196_v46  ;;  %v1271_v45 = vld [vmem:[%s1604_s18 + $0x190] sm:$0xf]  ;;  %v1393_v3 = vld [vmem:[%s1848_s1 + $0x1c] sm:$0xf0]  ;;  %v1390_v4 = vld [vmem:[%s1848_s1 + $0xc] sm:$0xf]  ;;  %v1244_v14 = vor.u32 %v1367_v62, %v1241_v63  ;;  %v1248_v15 = vor.u32 %v1372_v1, %v1247_v0 }
  0x36   : > { %758 = vmatpush.bf16.xpose.msra.mxu2 %v1200_v47  ;;  %v1379_v46 = vld [vmem:[%s1604_s18 + $0x1ac] sm:$0xf0]  ;;  %v1375_v47 = vld [vmem:[%s1604_s18 + $0x194] sm:$0xf]  ;;  %v1368_v9 = vld [vmem:[%s1604_s18 + $0x15c] sm:$0xf] }
  0x37   : > { %772 = vmatpush.bf16.xpose.msra.mxu3 %v1204_v48  ;;  %v1273_v48 = vld [vmem:[%s1604_s18 + $0x1b0] sm:$0xf0]  ;;  %v1272_v56 = vor.u32 %v1379_v46, %v1271_v45  ;;  %v1249_v10 = vld [vmem:[%s1604_s18 + $0x178] sm:$0xf0]  ;;  %v1215_v21 = vld [vmem:[%s1604_s18 + $0x118] sm:$0xf] }
  0x38   : > { %v1252_v16 = vor.u32 %v1368_v9, %v1249_v10  ;;  %v1364_v22 = vld [vmem:[%s1604_s18 + $0x134] sm:$0xf0]  ;;  %v356_v23 = vld [vmem:[%s1849_s2 + $0x8] sm:$0xff]  ;;  %v1360_v24 = vld [vmem:[%s1604_s18 + $0x11c] sm:$0xf]  ;;  %v1508_v26 = vmov 0  }
  0x39   : > { %v1217_v25 = vld [vmem:[%s1604_s18 + $0x138] sm:$0xf0]  ;;  %1441 = vset.pattern.permute.xlu0 %v1508_v26  ;;  %1442 = vset.pattern.permute.xlu1 %v1508_v26  ;;  %v1216_v29 = vor.u32 %v1364_v22, %v1215_v21  ;;  %v1175_v31 = vld [vmem:[%s1604_s18 + $0xd0] sm:$0xf]  ;;  %v1351_v33 = vld [vmem:[%s1604_s18 + $0xd4] sm:$0xf] }
  0x3a   : > { %364 = vperm.xlu0 %1441, %v356_v23   ;;  %1443 = vset.pattern.permute.xlu2 %v1508_v26  ;;  %v1220_v30 = vor.u32 %v1360_v24, %v1217_v25  ;;  %v1177_v34 = vld [vmem:[%s1604_s18 + $0xf0] sm:$0xf0]  ;;  %v1183_v35 = vld [vmem:[%s1604_s18 + $0xd8] sm:$0xf]  ;;  %v1352_v38 = vld [vmem:[%s1604_s18 + $0xdc] sm:$0xf] }
  0x3b   : > { %v1185_v39 = vld [vmem:[%s1604_s18 + $0xf8] sm:$0xf0]  ;;  %v1347_v45 = vld [vmem:[%s1604_s18 + $0xac] sm:$0xf0]  ;;  %v1343_v46 = vld [vmem:[%s1604_s18 + $0x94] sm:$0xf] }
  0x3c   : > { %v1344_v51 = vld [vmem:[%s1604_s18 + $0x9c] sm:$0xf]  ;;  %v1340_v62 = vld [vmem:[%s1604_s18 + $0x74] sm:$0xf0]  ;;  %s965_s19 = sshll.u32 %s275_s17, 4  ;;  %s955_s21 = scalar_lea.sflag [#allocation4], %s274_s14  ;;  %s966_s19 = int_to_ptr.vmem [resolvable:$true] %s965_s19 }
  0x3d   : > { %731 = vmatpush.bf16.xpose.msra.mxu0 %v1160_v57  ;;  %745 = vmatpush.bf16.xpose.msra.mxu1 %v1164_v58  ;;  %v1276_v57 = vor.u32 %v1375_v47, %v1273_v48  ;;  %v1280_v58 = vor.u32 %v1380_v50, %v1279_v49  ;;  %v922_v47 = vld [vmem:[#allocation2] sm:$0x1]  ;;  %v1145_v48 = vld [vmem:[%s1604_s18 + $0xb0] sm:$0xf0]  ;;  %v1151_v49 = vld [vmem:[%s1604_s18 + $0x98] sm:$0xf] }
  0x3e   : > { %759 = vmatpush.bf16.xpose.msra.mxu2 %v1168_v59  ;;  %v1284_v59 = vor.u32 %v1376_v53, %v1281_v54  ;;  %v1348_v50 = vld [vmem:[%s1604_s18 + $0xb4] sm:$0xf0]  ;;  %v1153_v52 = vld [vmem:[%s1604_s18 + $0xb8] sm:$0xf0]  ;;  %v1148_v54 = vor.u32 %v1343_v46, %v1145_v48 }
  0x3f   : > { %773 = vmatpush.bf16.xpose.msra.mxu3 %v1172_v60  ;;  %v1239_v60 = vld [vmem:[%s1604_s18 + $0x150] sm:$0xf]  ;;  %v1336_v63 = vld [vmem:[%s1604_s18 + $0x5c] sm:$0xf]  ;;  %v1087_v9 = vld [vmem:[%s1604_s18 + $0x18] sm:$0xf] }
  0x40   : > { %v1240_v13 = vor.u32 %v1371_v61, %v1239_v60  ;;  %v1113_v60 = vld [vmem:[%s1604_s18 + $0x70] sm:$0xf0]  ;;  %v1119_v61 = vld [vmem:[%s1604_s18 + $0x58] sm:$0xf]  ;;  %v1121_v0 = vld [vmem:[%s1604_s18 + $0x78] sm:$0xf0] }
  0x41   : > { %v1332_v10 = vld [vmem:[%s1604_s18 + $0x34] sm:$0xf0]  ;;  %v1392_v23 = vld [vmem:[%s1848_s1 + $0x1c] sm:$0xf] }
  0x42   : > { %v1055_v21 = vld [vmem:[%s1848_s1 + $0x18] sm:$0xf]  ;;  %v1057_v24 = vld [vmem:[%s1848_s1 + $0x38] sm:$0xf0] }
  0x43   : > { %v1396_v22 = vld [vmem:[%s1848_s1 + $0x34] sm:$0xf0] }
  0x44   : > { %v850_v46 = vld [vmem:[%s1851_s4 + $0x18] sm:$0xff] }
  0x45   : > { %732 = vmatpush.bf16.xpose.msra.mxu0 %v1128_v5  ;;  %746 = vmatpush.bf16.xpose.msra.mxu1 %v1132_v6  ;;  %v1032_v5 = vor.u32 %v1393_v3, %v1031_v2  ;;  %v1041_v6 = vld [vmem:[%s1848_s1 + $0x28] sm:$0xf0]  ;;  %v1120_v3 = vor.u32 %v1340_v62, %v1119_v61 }
  0x46   : > { %760 = vmatpush.bf16.xpose.msra.mxu2 %v1136_v7  ;;  %v1389_v7 = vld [vmem:[%s1848_s1 + $0x4] sm:$0xf]  ;;  %v1044_v11 = vor.u32 %v1390_v4, %v1041_v6  ;;  %v1124_v4 = vor.u32 %v1336_v63, %v1121_v0  ;;  %v1331_v6 = vld [vmem:[%s1604_s18 + $0x2c] sm:$0xf0]  ;;  %868 = vperm.xlu1 %1442, %v850_v46  }
  0x47   : > { %774 = vmatpush.bf16.xpose.msra.mxu3 %v1140_v8  ;;  %v1033_v8 = vld [vmem:[%s1848_s1 + $0x20] sm:$0xf0] }
  0x48   : > { %v1036_v12 = vor.u32 %v1389_v7, %v1033_v8  ;;  %v1327_v7 = vld [vmem:[%s1604_s18 + $0x14] sm:$0xf] }
  0x49   : > { %v1081_v8 = vld [vmem:[%s1604_s18 + $0x30] sm:$0xf0] }
  0x4d   : > { %733 = vmatpush.bf16.xpose.msra.mxu0 %v1096_v17  ;;  %747 = vmatpush.bf16.xpose.msra.mxu1 %v1100_v18  ;;  %v1207_v17 = vld [vmem:[%s1604_s18 + $0x110] sm:$0xf] }
  0x4e   : > { %761 = vmatpush.bf16.xpose.msra.mxu2 %v1104_v19  ;;  %v1363_v18 = vld [vmem:[%s1604_s18 + $0x12c] sm:$0xf0]  ;;  %v1359_v19 = vld [vmem:[%s1604_s18 + $0x114] sm:$0xf] }
  0x4f   : > { %775 = vmatpush.bf16.xpose.msra.mxu3 %v1108_v20  ;;  %v1209_v20 = vld [vmem:[%s1604_s18 + $0x130] sm:$0xf0]  ;;  %v1208_v27 = vor.u32 %v1363_v18, %v1207_v17  ;;  %v1047_v17 = vld [vmem:[%s1848_s1 + $0x10] sm:$0xf] }
  0x50   : > { %v1212_v28 = vor.u32 %v1359_v19, %v1209_v20  ;;  %v1395_v18 = vld [vmem:[%s1848_s1 + $0x2c] sm:$0xf0]  ;;  %v1391_v19 = vld [vmem:[%s1848_s1 + $0x14] sm:$0xf] }
  0x51   : > { %v1049_v20 = vld [vmem:[%s1848_s1 + $0x30] sm:$0xf0]  ;;  %v1048_v25 = vor.u32 %v1395_v18, %v1047_v17 }
  0x52   : > { %v1052_v26 = vor.u32 %v1391_v19, %v1049_v20 }
  0x55   : > { %734 = vmatpush.bf16.xpose.msra.mxu0 %v1064_v32  ;;  %748 = vmatpush.bf16.xpose.msra.mxu1 %v1068_v36  ;;  %v1355_v32 = vld [vmem:[%s1604_s18 + $0xec] sm:$0xf0]  ;;  %v1356_v36 = vld [vmem:[%s1604_s18 + $0xf4] sm:$0xf0] }
  0x56   : > { %762 = vmatpush.bf16.xpose.msra.mxu2 %v1072_v37  ;;  %v355_v37 = vld [vmem:[%s1849_s2] sm:$0xff] }
  0x57   : > { %776 = vmatpush.bf16.xpose.msra.mxu3 %v1076_v40  ;;  %v1176_v40 = vor.u32 %v1355_v32, %v1175_v31  ;;  %359 = vperm.xlu0 %1441, %v355_v37  }
  0x5c   : > { %735 = vmatmul.bf16.vlgmr.msra.gmra.mxu0 %v1032_v5  ;;  %749 = vmatmul.bf16.vlgmr.msra.gmra.mxu1 %v1036_v12  ;;  %v1079_v5 = vld [vmem:[%s1604_s18 + $0x10] sm:$0xf]  ;;  %v1089_v12 = vld [vmem:[%s1604_s18 + $0x38] sm:$0xf0] }
  0x5d   : > { %783 = vmatpush.bf16.xpose.msrb.mxu0 %v1304_v41  ;;  %797 = vmatpush.bf16.xpose.msrb.mxu1 %v1308_v42  ;;  %v1180_v41 = vor.u32 %v1351_v33, %v1177_v34  ;;  %v1184_v42 = vor.u32 %v1356_v36, %v1183_v35 }
  0x5e   : > { %811 = vmatpush.bf16.xpose.msrb.mxu2 %v1312_v43  ;;  %777 = vmatmul.bf16.vlgmr.msra.gmra.mxu3 %v1044_v11  ;;  %v1188_v43 = vor.u32 %v1352_v38, %v1185_v39  ;;  %v1328_v11 = vld [vmem:[%s1604_s18 + $0x1c] sm:$0xf] }
  0x5f   : > { %825 = vmatpush.bf16.xpose.msrb.mxu3 %v1316_v44  ;;  %763 = vmatmul.bf16.vlgmr.msra.gmra.mxu2 %v1040_v55  ;;  %v1143_v44 = vld [vmem:[%s1604_s18 + $0x90] sm:$0xf]  ;;  %v1152_v55 = vor.u32 %v1348_v50, %v1151_v49  ;;  %v848_v49 = vld [vmem:[%s1851_s4 + $0x8] sm:$0xff] }
  0x60   : > { %v1144_v53 = vor.u32 %v1347_v45, %v1143_v44  ;;  %925 = vperm.xlu0 %1441, %v922_v47   ;;  %858 = vperm.xlu2 %1443, %v848_v49  }
  0x65   : > { %784 = vmatpush.bf16.xpose.msrb.mxu0 %v1272_v56  ;;  %798 = vmatpush.bf16.xpose.msrb.mxu1 %v1276_v57  ;;  %v1156_v56 = vor.u32 %v1344_v51, %v1153_v52  ;;  %v1111_v57 = vld [vmem:[%s1604_s18 + $0x50] sm:$0xf] }
  0x66   : > { %812 = vmatpush.bf16.xpose.msrb.mxu2 %v1280_v58  ;;  %v1339_v58 = vld [vmem:[%s1604_s18 + $0x6c] sm:$0xf0] }
  0x67   : > { %826 = vmatpush.bf16.xpose.msrb.mxu3 %v1284_v59  ;;  %v1335_v59 = vld [vmem:[%s1604_s18 + $0x54] sm:$0xf]  ;;  %v1112_v1 = vor.u32 %v1339_v58, %v1111_v57  ;;  %v847_v58 = vld [vmem:[%s1851_s4] sm:$0xff] }
  0x68   : > { %v1116_v2 = vor.u32 %v1335_v59, %v1113_v60  ;;  %853 = vperm.xlu2 %1443, %v847_v58  }
  0x6d   : > { %785 = vmatpush.bf16.xpose.msrb.mxu0 %v1240_v13  ;;  %799 = vmatpush.bf16.xpose.msrb.mxu1 %v1244_v14  ;;  %v1080_v13 = vor.u32 %v1331_v6, %v1079_v5  ;;  %v1084_v14 = vor.u32 %v1327_v7, %v1081_v8  ;;  %v844_v7 = vld [vmem:[%s1850_s3 + $0x8] sm:$0xff]  ;;  %v846_v8 = vld [vmem:[%s1850_s3 + $0x18] sm:$0xff] }
  0x6e   : > { %813 = vmatpush.bf16.xpose.msrb.mxu2 %v1248_v15  ;;  %v1088_v15 = vor.u32 %v1332_v10, %v1087_v9  ;;  %v843_v9 = vld [vmem:[%s1850_s3] sm:$0xff]  ;;  %v845_v10 = vld [vmem:[%s1850_s3 + $0x10] sm:$0xff] }
  0x6f   : > { %827 = vmatpush.bf16.xpose.msrb.mxu3 %v1252_v16  ;;  %v1092_v16 = vor.u32 %v1328_v11, %v1089_v12 }
  0x75   : > { %786 = vmatpush.bf16.xpose.msrb.mxu0 %v1208_v27  ;;  %800 = vmatpush.bf16.xpose.msrb.mxu1 %v1212_v28  ;;  %v1056_v27 = vor.u32 %v1396_v22, %v1055_v21  ;;  %v1060_v28 = vor.u32 %v1392_v23, %v1057_v24 }
  0x76   : > { %814 = vmatpush.bf16.xpose.msrb.mxu2 %v1216_v29 }
  0x77   : > { %828 = vmatpush.bf16.xpose.msrb.mxu3 %v1220_v30 }
  0x7d   : > { %787 = vmatpush.bf16.xpose.msrb.mxu0 %v1176_v40  ;;  %801 = vmatpush.bf16.xpose.msrb.mxu1 %v1180_v41 }
  0x7e   : > { %815 = vmatpush.bf16.xpose.msrb.mxu2 %v1184_v42 }
  0x7f   : > { %829 = vmatpush.bf16.xpose.msrb.mxu3 %v1188_v43 }
  0x85   : > { %788 = vmatpush.bf16.xpose.msrb.mxu0 %v1144_v53  ;;  %802 = vmatpush.bf16.xpose.msrb.mxu1 %v1148_v54 }
  0x86   : > { %816 = vmatpush.bf16.xpose.msrb.mxu2 %v1152_v55  ;;  %v849_v55 = vld [vmem:[%s1851_s4 + $0x10] sm:$0xff] }
  0x87   : > { %830 = vmatpush.bf16.xpose.msrb.mxu3 %v1156_v56  ;;  %863 = vperm.xlu1 %1442, %v849_v55  }
  0x8d   : > { %789 = vmatpush.bf16.xpose.msrb.mxu0 %v1112_v1  ;;  %803 = vmatpush.bf16.xpose.msrb.mxu1 %v1116_v2 }
  0x8e   : > { %817 = vmatpush.bf16.xpose.msrb.mxu2 %v1120_v3 }
  0x8f   : > { %831 = vmatpush.bf16.xpose.msrb.mxu3 %v1124_v4 }
  0x95   : > { %790 = vmatpush.bf16.xpose.msrb.mxu0 %v1080_v13  ;;  %804 = vmatpush.bf16.xpose.msrb.mxu1 %v1084_v14 }
  0x96   : > { %818 = vmatpush.bf16.xpose.msrb.mxu2 %v1088_v15 }
  0x97   : > { %832 = vmatpush.bf16.xpose.msrb.mxu3 %v1092_v16 }
  0x9c   : > { %791 = vmatmul.bf16.vlgmr.msrb.gmra.mxu0 %v1048_v25  ;;  %805 = vmatmul.bf16.vlgmr.msrb.gmra.mxu1 %v1052_v26 }
  0x9d   : > { %819 = vmatmul.bf16.vlgmr.msrb.gmra.mxu2 %v1056_v27 }
  0x9e   : > { %833 = vmatmul.bf16.vlgmr.msrb.gmra.mxu3 %v1060_v28 }
  0xac   : > { %v365_v29 = vpop.permute.xlu0 %364 }
  0xb8   : > { %v869_v12 = vpop.permute.xlu1 %868 }
  0xba   : > { %v859_v11 = vpop.permute.xlu2 %858 }
  0xc2   : > { %v854_v18 = vpop.permute.xlu2 %853 }
  0xc9   : > { %v360_v33 = vpop.permute.xlu0 %359 }
  0xd9   : > { %v736_v30 = vpop.f32.mrf.mxu0  ;;  %v750_v31 = vpop.f32.mrf.mxu1 }
  0xda   : > { %v737_v35 = vadd.f32 %v736_v30, %v360_v33 }
  0xdc   : > { %v751_v38 = vadd.f32 %v750_v31, %v737_v35  ;;  %v921_v31 = vld [vmem:[%s1852_s5] sm:$0x1] }
  0xe1   : > { %v778_v34 = vpop.f32.mrf.mxu3  ;;  %v738_v36 = vpop.f32.mrf.mxu0 }
  0xe2   : > { %v764_v32 = vpop.f32.mrf.mxu2  ;;  %v752_v37 = vpop.f32.mrf.mxu1  ;;  %v739_v39 = vadd.f32 %v738_v36, %v365_v29 }
  0xe3   : > { %v765_v43 = vadd.f32 %v764_v32, %v751_v38  ;;  %v926_v32 = vpop.permute.xlu0 %925 }
  0xe4   : > { %v753_v41 = vadd.f32 %v752_v37, %v739_v39  ;;  %v928_v33 = vperm.slane %v926_v32, 0 }
  0xe5   : > { %v779_v48 = vadd.f32 %v778_v34, %v765_v43 }
  0xe9   : > { %v780_v42 = vpop.f32.mrf.mxu3 }
  0xea   : > { %v766_v40 = vpop.f32.mrf.mxu2 }
  0xeb   : > { %v767_v47 = vadd.f32 %v766_v40, %v753_v41 }
  0xed   : > { %v781_v52 = vadd.f32 %v780_v42, %v767_v47 }
  0xf9   : > { %v864_v21 = vpop.permute.xlu1 %863 }
 0x119   : > { %v792_v44 = vpop.f32.mrf.mxu0  ;;  %v806_v45 = vpop.f32.mrf.mxu1 }
 0x11a   : > { %v793_v50 = vadd.f32 %v792_v44, %v779_v48 }
 0x11c   : > { %v807_v56 = vadd.f32 %v806_v45, %v793_v50 }
 0x120   : > { %v820_v51 = vpop.f32.mrf.mxu2 }
 0x121   : > { %v834_v53 = vpop.f32.mrf.mxu3  ;;  %v794_v54 = vpop.f32.mrf.mxu0  ;;  %v821_v59 = vadd.f32 %v820_v51, %v807_v56 }
 0x122   : > { %v795_v57 = vadd.f32 %v794_v54, %v781_v52  ;;  %v808_v60 = vpop.f32.mrf.mxu1 }
 0x123   : > { %v835_v63 = vadd.f32 %v834_v53, %v821_v59 }
 0x124   : > { %v809_v61 = vadd.f32 %v808_v60, %v795_v57 }
 0x125   : > { %v839_v3 = vmax.f32 %v835_v63, 0.0 }
 0x127   : > { %v841_v6 = vmin.f32 %v839_v3, 1.0 }
 0x128   : > { %v822_v62 = vpop.f32.mrf.mxu2 }
 0x129   : > { %v823_v0 = vadd.f32 %v822_v62, %v809_v61  ;;  %v836_v1 = vpop.f32.mrf.mxu3 }
 0x12b   : > { %v837_v2 = vadd.f32 %v836_v1, %v823_v0 }
 0x12d   : > { %v840_v4 = vmax.f32 %v837_v2, 0.0 }
 0x12f   : > { %v842_v5 = vmin.f32 %v840_v4, 1.0 }
 0x131   : > { %898 = vmatpush.msra.mxu0 %v842_v5  ;;  %1397 = vmatpush.msra.mxu2 %v842_v5 }
 0x132   : > { %1398 = vmatpush.msra.mxu3 %v842_v5 }
 0x133   : > { %899 = vmatpush.msra.mxu0 %v841_v6  ;;  %1399 = vmatpush.msra.mxu2 %v841_v6 }
 0x134   : > { %1400 = vmatpush.msra.mxu3 %v841_v6  ;;  %1318 = vmatmul.msk.f32.vlgmr.msra.gmra.mxu2 %vm871_vm0, %v844_v7 }
 0x135   : > { %1320 = vmatmul.msk.f32.vlgmr.msra.gmra.mxu3 %vm871_vm0, %v846_v8  ;;  %1317 = vmatmul.msk.f32.vlgmr.msra.gmra.mxu0 %vm871_vm0, %v843_v9 }
 0x13c   : > { %1319 = vmatmul.msk.f32.gmra.mxu2 %vm871_vm0, %v845_v10 }
 0x1b2   : > { %v901_v19 = vpop.f32.mrf.mxu0 }
 0x1b3   : > { %v902_v24 = vadd.f32 %v901_v19, %v854_v18 }
 0x1b5   : > { %v913_v28 = vmax.f32 %v902_v24, 0.0 }
 0x1b7   : > { %v904_v13 = vpop.f32.mrf.mxu2  ;;  %v917_v30 = vmin.f32 %v913_v28, 1.0 }
 0x1b8   : > { %v910_v14 = vpop.f32.mrf.mxu3  ;;  %v905_v20 = vadd.f32 %v904_v13, %v859_v11 }
 0x1b9   : > { %v911_v15 = vadd.f32 %v910_v14, %v869_v12 }
 0x1ba   : > { %v914_v25 = vmax.f32 %v905_v20, 0.0 }
 0x1bb   : > { %v916_v16 = vmax.f32 %v911_v15, 0.0 }
 0x1bc   : > { %v918_v29 = vmin.f32 %v914_v25, 1.0 }
 0x1bd   : > { %v920_v17 = vmin.f32 %v916_v16, 1.0 }
 0x1bf   : > { %v907_v22 = vpop.f32.mrf.mxu2  ;;  %945 = vmatpush.msra.mxu1 %v920_v17 }
 0x1c0   : > { %v908_v23 = vadd.f32 %v907_v22, %v864_v21 }
 0x1c2   : > { %v915_v26 = vmax.f32 %v908_v23, 0.0 }
 0x1c4   : > { %v919_v27 = vmin.f32 %v915_v26, 1.0 }
 0x1c6   : > { %946 = vmatpush.msra.mxu1 %v919_v27 }
 0x1c8   : > { %947 = vmatpush.msra.mxu1 %v918_v29 }
 0x1ca   : > { %948 = vmatpush.msra.mxu1 %v917_v30 }
 0x1cb   : > { %1321 = vmatmul.msk.f32.vlgmr.msra.gmra.mxu1 %vm929_vm1, %v921_v31 }
 0x248   : > { %v950_v34 = vpop.f32.mrf.mxu1 }
 0x249   : > { %v951_v35 = vadd.f32 %v950_v34, %v928_v33 }
 0x24b   : > { %953 = vst [vmem:[%s275_s17] sm:$0x1] %v951_v35 }
 0x24c   : > { %1471 = shalt.err (!%p1468_p3)
}
 0x24d   : > { %1401 = dma.vmem_to_hbm [thread:$0]  (%p1590_p5), %s966_s19, 16, %s968_s20, %s955_s21  }
 0x24e PF: > { %p1407_p4 = scmp.ge.s32.totalorder %s1506_s29, 2  ;;  %s979_s10 = sand.u32 1, %s1494_s26  }
 0x24f   : > { %s980_s14 = scalar_lea.sflag [#allocation4], %s979_s10 }
 0x250   : > { %p1404_p7 = pnand %p1407_p4, %p1594_p6 }
 0x252   : > { %p1405_p8 = pneg %p1404_p7 }
 0x254   : > { %1489 = dma.done.wait (%p1405_p8), %s980_s14, 16  }
 0x255   : > { %1491 = vsyncadd (%p1405_p8), %s980_s14, 4294967280  ;;  %p19_p9 = scmp.ge.s32.totalorder %s1577_s8, 4   ;;  %s1857_s26 = smov %s1498_s27 }
 0x256   : > { %s1858_s27 = smov %s1502_s28  ;;  %s1859_s28 = smov %s1588_s11 }
 0x257   : > { %s1860_s29 = smov %s1577_s8  ;;  %21 = sbr.rel (!%p19_p9) target bundleno = 6 (0x6), region = 83 }
 0x25c   :  { %985 = vsyncpa [#allocation4], 1 }
 0x25d   :  { %987 = vsyncpa [#allocation4 + $0x1], 1 }

</bundles_post_ra>
